<compile_context>
chip_gen: v7x
topology: tpu7x:2x2x1
jax: 0.10.0
libtpu: 0.0.40
codegen_flags: <defaults>
</compile_context>

<pallas_src>
import functools

import jax
import jax.numpy as jnp
from jax import lax
from jax.experimental import pallas as pl
from jax.experimental.pallas import tpu as pltpu


def _target_mask_kernel(x_ref, o_ref, row_ref, *, pad_ix: int, tq: int):
    """Writes one (1, TQ, S) tile of the combined pad & causal mask.

    x_ref  : (1, 1, S) int32 token ids for the current batch row.
    o_ref  : (1, TQ, S) bool output tile.
    row_ref: (TQ, S) int32 VMEM scratch holding the batch-invariant global
             query-row index for this query tile.
    """
    q_tile = pl.program_id(0)   # query-tile index ("parallel" axis)
    b = pl.program_id(1)        # batch index (innermost, "arbitrary" axis)
    s = x_ref.shape[-1]

    # Build the batch-invariant row-index template once per query tile and
    # reuse it from VMEM scratch for every batch row (review item 2).
    @pl.when(b == 0)
    def _():
        row_ref[...] = q_tile * tq + lax.broadcasted_iota(jnp.int32, (tq, s), 0)

    # Fold the pad mask into a sentinel column index (review item 1): a real
    # key keeps its index k, a padded key becomes S (> any query index), so a
    # single `row >= masked_col` compare yields pad_mask & causal_tril.
    # This costs only a (1, S) where() per batch row.
    col = lax.broadcasted_iota(jnp.int32, (1, s), 1)
    masked_col = jnp.where(x_ref[0] != pad_ix, col, s)          # (1, S)

    # Single compare per output vreg; result is bool and written exactly once.
    o_ref[0] = row_ref[...] >= masked_col                        # (TQ, S) bool


def _vmem_limit_bytes() -> int:
    """Generation-aware scoped-VMEM limit (review item 4)."""
    try:
        cap = int(pltpu.get_tpu_info().vmem_capacity_bytes)
    except Exception:
        cap = 64 * 1024 * 1024   # conservative: v7x per-TensorCore VMEM
    return min(cap // 2, 64 * 1024 * 1024)


def _pick_query_tile(s_pad: int, vmem_budget_bytes: int) -> int:
    """Largest power-of-two query tile that divides the padded seq len while
    keeping (i32 row scratch + double-buffered bool output + transient i32
    intermediates) ~= 16 bytes/elem inside the VMEM budget."""
    per_row_bytes = 16 * s_pad
    for cand in (1024, 512, 256, 128, 64, 32, 16, 8):
        if cand <= s_pad and s_pad % cand == 0 and cand * per_row_bytes <= vmem_budget_bytes:
            return cand
    return 8  # s_pad is a multiple of 128, so 8 always divides it


def naive_target_masker(input_ids: jax.Array, pad_ix: int) -> jax.Array:
    """Pallas equivalent of NaiveTargetMasker.forward.

    Args:
      input_ids: (B, S) integer array of token ids.
      pad_ix: padding token index.

    Returns:
      (B, S, S) bool mask.
    """
    B, S = input_ids.shape

    # Pad the sequence length to a multiple of 128 (lane-dense unmasked
    # stores; always-legal tiling).  Padded keys use pad_ix so they would be
    # masked anyway; padded rows/columns are sliced off below (review item 5).
    s_pad = ((S + 127) // 128) * 128
    vmem_limit = _vmem_limit_bytes()
    tq = _pick_query_tile(s_pad, vmem_limit // 2)
    n_q = s_pad // tq

    x = input_ids.astype(jnp.int32)
    if s_pad != S:
        x = jnp.pad(x, ((0, 0), (0, s_pad - S)), constant_values=int(pad_ix))
    # (B, 1, S) so the input BlockSpec's trailing two dims equal the full
    # array dims; the row is re-DMA'd per batch step but that is only 4*S
    # bytes and fully pipelined.
    x = x.reshape(B, 1, s_pad)

    kernel = functools.partial(_target_mask_kernel, pad_ix=int(pad_ix), tq=tq)

    out = pl.pallas_call(
        kernel,
        out_shape=jax.ShapeDtypeStruct((B, s_pad, s_pad), jnp.bool_),
        grid_spec=pltpu.PrefetchScalarGridSpec(
            num_scalar_prefetch=0,
            # q-tile axis first ("parallel", megacore-sharded); batch axis
            # innermost ("arbitrary") so the row-index scratch built at b == 0
            # is reused for every batch row of that query tile.
            grid=(n_q, B),
            in_specs=[pl.BlockSpec((1, 1, s_pad), lambda q, b: (b, 0, 0))],
            out_specs=pl.BlockSpec((1, tq, s_pad), lambda q, b: (b, q, 0)),
            scratch_shapes=[pltpu.VMEM((tq, s_pad), jnp.int32)],
        ),
        compiler_params=pltpu.CompilerParams(
            dimension_semantics=("parallel", "arbitrary"),
            vmem_limit_bytes=vmem_limit,
        ),
        cost_estimate=pl.CostEstimate(
            flops=B * s_pad * s_pad,
            transcendentals=0,
            bytes_accessed=B * s_pad * s_pad + 4 * B * s_pad,
        ),
    )(x)

    if s_pad != S:
        out = out[:, :S, :S]
    return out


def _reference(input_ids: jax.Array, pad_ix: int) -> jax.Array:
    B, S = input_ids.shape
    pad = (input_ids != pad_ix)[:, None, :]                   # (B, 1, S)
    sub = jnp.tril(jnp.ones((S, S), dtype=jnp.bool_))[None]   # (1, S, S)
    return jnp.logical_and(pad, sub)                          # (B, S, S)


if __name__ == "__main__":
    PAD_IX = 0
    key = jax.random.PRNGKey(0)

    # Case 1: small ragged seq (exercises the pad-to-128 + slice path).
    B, S = 2, 8
    input_ids = jax.random.randint(key, (B, S), minval=0, maxval=10, dtype=jnp.int32)
    input_ids = input_ids.at[:, -2:].set(PAD_IX)   # explicit tail padding
    mask = jax.block_until_ready(naive_target_masker(input_ids, PAD_IX))
    ref = _reference(input_ids, PAD_IX)
    assert mask.shape == (B, S, S), mask.shape
    assert mask.dtype == jnp.bool_, mask.dtype
    assert bool(jnp.all(mask == ref)), "mismatch vs reference (ragged S)"

    # Case 2: 128-multiple seq (exercises the no-padding, tiled path).
    B2, S2 = 3, 256
    key2 = jax.random.PRNGKey(0)
    ids2 = jax.random.randint(key2, (B2, S2), minval=0, maxval=10, dtype=jnp.int32)
    ids2 = ids2.at[:, -7:].set(PAD_IX)
    mask2 = jax.block_until_ready(naive_target_masker(ids2, PAD_IX))
    ref2 = _reference(ids2, PAD_IX)
    assert mask2.shape == (B2, S2, S2), mask2.shape
    assert mask2.dtype == jnp.bool_, mask2.dtype
    assert bool(jnp.all(mask2 == ref2)), "mismatch vs reference (aligned S)"

    print("KERNEL_OK")
</pallas_src>

<mosaic_0001>
module attributes {stable_mosaic.version = 11 : i64} {
  func.func @_target_mask_kernel(%arg0: i32, %arg1: i32, %arg2: memref<1x1x128xi32, #tpu.memory_space<vmem>>, %arg3: memref<1x128x128xi32, #tpu.memory_space<vmem>>, %arg4: memref<128x128xi32, #tpu.memory_space<vmem>>) attributes {dimension_semantics = [#tpu.dimension_semantics<parallel>, #tpu.dimension_semantics<arbitrary>], iteration_bounds = array<i64: 1, 2>, scalar_prefetch = 0 : i64, scratch_operands = 1 : i64, tpu.core_type = #tpu.core_type<tc>, window_params = [{transform_indices = @transform_0, window_bounds = array<i64: 1, 1, 128>}, {transform_indices = @transform_1, window_bounds = array<i64: 1, 128, 128>}]} {
    %c0_i32 = arith.constant 0 : i32
    %0 = arith.cmpi eq, %arg1, %c0_i32 : i32
    %1 = arith.extui %0 : i1 to i32
    %c0_i32_0 = arith.constant 0 : i32
    %2 = arith.cmpi ne, %1, %c0_i32_0 : i32
    scf.if %2 {
      %c128_i32_9 = arith.constant 128 : i32
      %18 = arith.muli %arg0, %c128_i32_9 : i32
      %19 = tpu.iota {dimensions = array<i32: 0>} : vector<128x128xi32>
      %20 = vector.broadcast %18 : i32 to vector<128x128xi32>
      %21 = arith.addi %20, %19 : vector<128x128xi32>
      %c0_10 = arith.constant 0 : index
      %c0_11 = arith.constant 0 : index
      %22 = vector.load %arg4[%c0_10, %c0_11] : memref<128x128xi32, #tpu.memory_space<vmem>>, vector<128x128xi32>
      tpu.vector_store %arg4[%c0_10, %c0_11], %21 {strides = array<i32>} : memref<128x128xi32, #tpu.memory_space<vmem>>, vector<128x128xi32>,
    } else {
    }
    %3 = tpu.iota {dimensions = array<i32: 1>} : vector<1x128xi32>
    %c0 = arith.constant 0 : index
    %c0_1 = arith.constant 0 : index
    %c0_2 = arith.constant 0 : index
    %4 = vector.load %arg2[%c0, %c0_1, %c0_2] : memref<1x1x128xi32, #tpu.memory_space<vmem>>, vector<1x1x128xi32>
    %5 = vector.shape_cast %4 : vector<1x1x128xi32> to vector<1x128xi32>
    %c0_i32_3 = arith.constant 0 : i32
    %6 = vector.broadcast %c0_i32_3 : i32 to vector<1x128xi32>
    %7 = arith.cmpi ne, %5, %6 : vector<1x128xi32>
    %c128_i32 = arith.constant 128 : i32
    %8 = vector.broadcast %c128_i32 : i32 to vector<1x128xi32>
    %9 = arith.select %7, %3, %8 : vector<1x128xi1>, vector<1x128xi32>
    %c0_4 = arith.constant 0 : index
    %c0_5 = arith.constant 0 : index
    %10 = vector.load %arg4[%c0_4, %c0_5] : memref<128x128xi32, #tpu.memory_space<vmem>>, vector<128x128xi32>
    %11 = vector.broadcast %9 : vector<1x128xi32> to vector<128x128xi32>
    %12 = arith.cmpi sge, %10, %11 : vector<128x128xi32>
    %c0_6 = arith.constant 0 : index
    %c0_7 = arith.constant 0 : index
    %c0_8 = arith.constant 0 : index
    %13 = vector.load %arg3[%c0_6, %c0_7, %c0_8] : memref<1x128x128xi32, #tpu.memory_space<vmem>>, vector<1x128x128xi32>
    %14 = arith.extui %12 : vector<128x128xi1> to vector<128x128xi32>
    %15 = vector.shape_cast %13 : vector<1x128x128xi32> to vector<128x128xi32>
    %16 = vector.shape_cast %14 : vector<128x128xi32> to vector<1x128x128xi32>
    %cst = arith.constant dense<0> : vector<128x128xi32>
    %17 = arith.cmpi ne, %15, %cst : vector<128x128xi32>
    tpu.vector_store %arg3[%c0_6, %c0_7, %c0_8], %16 {strides = array<i32>} : memref<1x128x128xi32, #tpu.memory_space<vmem>>, vector<1x128x128xi32>,
    return
  }
  func.func @transform_0(%arg0: i32, %arg1: i32) -> (i32, i32, i32) {
    %c0_i32 = arith.constant 0 : i32
    %c0_i32_0 = arith.constant 0 : i32
    %c0_i32_1 = arith.constant 0 : i32
    return %arg1, %c0_i32, %c0_i32_0 : i32, i32, i32
  }
  func.func @transform_1(%arg0: i32, %arg1: i32) -> (i32, i32, i32) {
    %c0_i32 = arith.constant 0 : i32
    %c0_i32_0 = arith.constant 0 : i32
    return %arg1, %arg0, %c0_i32 : i32, i32, i32
  }
}

</mosaic_0001>

<bundles_post_ra>
// kernel: tpu_custom_call.1
= control target key start
LH: loop header
LB: loop body
LE: loop exit
PB: predicated region body
PF: predicated region fallthrough
CT: control target
= control target key end

     0   :  { %6 = vsyncpa [#allocation4], 0  ;;  %s680_s0 = inlined_call_operand.hbm [shape: s32[2,1,128], index: 0, kind: input, shape index: {}]   ;;  %s681_s1 = inlined_call_operand.vmem [shape: s32[2,128,128], index: 1, kind: output, shape index: {}]  }
   0x1   :  { %8 = vsyncpa [#allocation4 + $0x1], 0  ;;  %s533_s6 = smov 0   ;;  %s535_s7 = smov 0  }
   0x2   :  { %s537_s8 = smov 0   ;;  %s539_s9 = smov 0  }
   0x3   :  { %s541_s10 = smov 0   ;;  %s543_s11 = smov 0  }
   0x4 LB: > { %s371_s12 = sadd.s32 4294967295, %s519_s11   ;;  %s23_s13 = sadd.s32 1, %s515_s10  ;;  %s519_s11 = sphi %s543_s11, %s14_s11   ;;  %s515_s10 = sphi %s541_s10, %s691_s10   ;;  %s511_s9 = sphi %s539_s9, %s690_s9   ;;  %s507_s8 = sphi %s537_s8, %s689_s8   ;;  %s503_s7 = sphi %s535_s7, %s688_s7   ;;  %s499_s6 = sphi %s533_s6, %s687_s6  }
   0x5   : > { %p24_p0 = scmp.ge.s32.totalorder %s23_s13, 2  ;;  %s33_s14 = sadd.s32 1, %s507_s8 }
   0x6   : > { %p40_p1 = scmp.ne.s32.totalorder %s507_s8, %s503_s7  ;;  %p41_p2 = scmp.eq.s32.totalorder %s519_s11, 0 }
   0x7   : > { %s693_s13 = smov (%p24_p0, %s23_s13), 0  ;;  %p46_p4 = scmp.ne.s32.totalorder %s503_s7, %s499_s6 }
   0x8   : > { %p569_p3 = por %p41_p2, %p40_p1  ;;  %s30_s16 = ssub.s32 %s515_s10, %s693_s13 }
   0x9   : > { %p47_p5 = scmp.eq.s32.totalorder %s371_s12, 0  ;;  %p31_p6 = scmp.eq.s32.totalorder %s30_s16, 0 }
   0xa   : > { %p389_p8 = scmp.lt.s32.totalorder %s519_s11, 2  ;;  %s98_s19 = sand.u32 1, %s507_s8  }
   0xb   : > { %p576_p7 = por %p47_p5, %p46_p4  ;;  %s375_s20 = sshll.u32 %s515_s10, 4 }
   0xc   : > { %s582_s18 = scalar_select %p31_p6, %s507_s8, %s33_s14  }
   0xd   : > { %s589_s23 = scalar_lea.hbm %s680_s0, %s375_s20  ;;  %s101_s24 = scalar_lea.vmem [#allocation3], %s98_s19 }
   0xe   : > { %s108_s25 = sshll.u32 %s101_s24, 4  ;;  %p595_p9 = pnand %p389_p8, %p569_p3  ;;  %s591_s25 = int_to_ptr.vmem [resolvable:$true] %s108_s25 }
   0xf   : > { %s99_s27 = scalar_lea.sflag [#allocation4], %s98_s19  ;;  %s439_s28 = scalar_lea.hbm %s589_s23, 16 }
  0x10   : > { %p440_p12 = scmp.ne.s32.totalorder %s589_s23, %s439_s28  ;;  %p441_p13 = pneg %p595_p9 }
  0x11   : > { %s444_s2 = scalar_lea.hbm %s680_s0, 32  ;;  %p445_p2 = scmp.lt.u32.totalorder %s589_s23, %s680_s0 }
  0x12   : > { %p442_p0 = pnand %p441_p13, %p440_p12  ;;  %p446_p3 = scmp.lt.u32.totalorder %s444_s2, %s439_s28 }
  0x13   : > { %p448_p5 = scmp.lt.u32.totalorder %s439_s28, %s589_s23 }
  0x14   : > { %p443_p1 = pneg %p442_p0  ;;  %p447_p4 = por %p446_p3, %p445_p2 }
  0x16   : > { %p449_p6 = por %p448_p5, %p447_p4 }
  0x18   : > { %p450_p8 = pnand %p449_p6, %p443_p1 }
  0x1a   : > { %453 = shalt.err (!%p450_p8)
}
  0x1b   : > { %s454_s5 = scalar_lea.vmem %s591_s25, 16  ;;  %s521_s6 = smov [#allocation3]  }
  0x1c   : > { %p455_p12 = scmp.ne.s32.totalorder %s591_s25, %s454_s5  ;;  %s459_s12 = sshll.u32 %s521_s6, 4  ;;  %s460_s12 = int_to_ptr.vmem [resolvable:$false] %s459_s12 }
  0x1d   : > { %s461_s14 = scalar_lea.vmem %s460_s12, 32  ;;  %p462_p11 = scmp.lt.s32.totalorder %s591_s25, %s460_s12 }
  0x1e   : > { %p457_p0 = pnand %p455_p12, %p441_p13  ;;  %p463_p2 = scmp.lt.s32.totalorder %s461_s14, %s454_s5 }
  0x20   : > { %p458_p10 = pneg %p457_p0  ;;  %p464_p3 = por %p463_p2, %p462_p11 }
  0x22   : > { %p465_p4 = pnand %p464_p3, %p458_p10 }
  0x24   : > { %468 = shalt.err (!%p465_p4)
}
  0x25   : > { %388 = dma.hbm_to_vmem [thread:$0]  (!%p595_p9), %s589_s23, 16, %s591_s25, %s99_s27  }
  0x26   : > { %p685_p1 = scmp.lt.s32.totalorder %s519_s11, 3  ;;  %p686_p5 = scmp.ge.s32.totalorder %s519_s11, 1 }
  0x28   : > { %p114_p13 = pnand %p686_p5, %p685_p1 }
  0x29   : > { %s119_s15 = sand.u32 (!%p114_p13), 1, %s503_s7  }
  0x2a   : > { %117 = sbr.rel (%p114_p13) target bundleno = 83 (0x53), region = 24  ;;  %s120_s16 = scalar_lea.sflag (!%p114_p13), [#allocation4], %s119_s15 }
  0x2b   : > { %s631_s19 = scalar_lea.vmem (!%p114_p13), [#allocation3], %s119_s15 }
  0x31   : > { %494 = dma.done.wait (%p576_p7), %s120_s16, 16  }
  0x32   : > { %496 = vsyncadd (%p576_p7), %s120_s16, 4294967280  ;;  %p145_p10 = scmp.lt.s32.totalorder %s511_s9, 1  ;;  %p379_p9 = scmp.ne.s32.totalorder %s511_s9, 0 }
  0x33   : > { %v159_v0 = vlaneseq (!%p379_p9) }
  0x34   : > { %s146_s20 = scalar_select %p145_p10, %s511_s9, 1 }
  0x35   : > { %157 = sbr.rel (%p379_p9) target bundleno = 65 (0x41), region = 32  ;;  %v160_v1 = vshrl.u32 (!%p379_p9), %v159_v0, 7 }
  0x36   : > { %s382_s21 = sshll.u32 %s146_s20, 7 }
  0x37   : > { %s642_s24 = scalar_lea.vmem %s681_s1, %s382_s21  ;;  %193 = vst [vmem:[#allocation2] sm:$0xff] (!%p379_p9), %v160_v1  ;;  %v161_v2 = vadd.s32 (!%p379_p9), 8, %v160_v1  ;;  %v162_v3 = vadd.s32 (!%p379_p9), 16, %v160_v1  ;;  %v163_v4 = vadd.s32 (!%p379_p9), 24, %v160_v1  ;;  %v164_v5 = vadd.s32 (!%p379_p9), 32, %v160_v1 }
  0x38   : > { %v165_v6 = vadd.s32 (!%p379_p9), 40, %v160_v1  ;;  %v166_v7 = vadd.s32 (!%p379_p9), 48, %v160_v1  ;;  %v167_v8 = vadd.s32 (!%p379_p9), 56, %v160_v1  ;;  %v168_v9 = vadd.s32 (!%p379_p9), 64, %v160_v1 }
  0x39   : > { %194 = vst [vmem:[#allocation2 + $0x8] sm:$0xff] (!%p379_p9), %v161_v2  ;;  %195 = vst [vmem:[#allocation2 + $0x10] sm:$0xff] (!%p379_p9), %v162_v3  ;;  %v169_v10 = vadd.s32 (!%p379_p9), 72, %v160_v1  ;;  %v170_v11 = vadd.s32 (!%p379_p9), 80, %v160_v1  ;;  %v171_v12 = vadd.s32 (!%p379_p9), 88, %v160_v1  ;;  %v172_v13 = vadd.s32 (!%p379_p9), 96, %v160_v1 }
  0x3a   : > { %196 = vst [vmem:[#allocation2 + $0x18] sm:$0xff] (!%p379_p9), %v163_v4  ;;  %197 = vst [vmem:[#allocation2 + $0x20] sm:$0xff] (!%p379_p9), %v164_v5  ;;  %v173_v14 = vadd.s32 (!%p379_p9), 104, %v160_v1  ;;  %v174_v15 = vadd.s32 (!%p379_p9), 112, %v160_v1  ;;  %v175_v16 = vadd.s32 (!%p379_p9), 120, %v160_v1 }
  0x3b   : > { %198 = vst [vmem:[#allocation2 + $0x28] sm:$0xff] (!%p379_p9), %v165_v6  ;;  %199 = vst [vmem:[#allocation2 + $0x30] sm:$0xff] (!%p379_p9), %v166_v7 }
  0x3c   : > { %200 = vst [vmem:[#allocation2 + $0x38] sm:$0xff] %v167_v8  ;;  %201 = vst [vmem:[#allocation2 + $0x40] sm:$0xff] %v168_v9 }
  0x3d   : > { %202 = vst [vmem:[#allocation2 + $0x48] sm:$0xff] %v169_v10  ;;  %203 = vst [vmem:[#allocation2 + $0x50] sm:$0xff] %v170_v11 }
  0x3e   : > { %204 = vst [vmem:[#allocation2 + $0x58] sm:$0xff] %v171_v12  ;;  %205 = vst [vmem:[#allocation2 + $0x60] sm:$0xff] %v172_v13 }
  0x3f   : > { %206 = vst [vmem:[#allocation2 + $0x68] sm:$0xff] %v173_v14  ;;  %207 = vst [vmem:[#allocation2 + $0x70] sm:$0xff] %v174_v15 }
  0x40   : > { %208 = vst [vmem:[#allocation2 + $0x78] sm:$0xff] %v175_v16 }
  0x41 PF: > { %v209_v17 = vlaneseq  ;;  %v211_v18 = vld [vmem:[%s631_s19] sm:$0x1]  ;;  %v522_v34 = vmov 0  }
  0x42   : > { %vm212_vm0 = vcmp.ne.s32.totalorder %v211_v18, 0 }
  0x43   : > { %v210_v19 = vand.u32 127, %v209_v17  ;;  %v231_v20 = vshrl.u32 %v209_v17, 7  ;;  %v214_v22 = vld [vmem:[#allocation2] sm:$0xff] }
  0x44   : > { %v223_v33 = vld [vmem:[#allocation2 + $0x48] sm:$0xff]  ;;  %v224_v39 = vld [vmem:[#allocation2 + $0x50] sm:$0xff] }
  0x45   : > { %v213_v21 = vsel %vm212_vm0, %v210_v19, 128  ;;  %v232_v23 = vsub.s32 0, %v231_v20  ;;  %v215_v24 = vld [vmem:[#allocation2 + $0x8] sm:$0xff]  ;;  %v216_v25 = vld [vmem:[#allocation2 + $0x10] sm:$0xff]  ;;  %v225_v40 = vld [vmem:[#allocation2 + $0x58] sm:$0xff] }
  0x46   : > { %v217_v26 = vld [vmem:[#allocation2 + $0x18] sm:$0xff]  ;;  %v218_v28 = vld [vmem:[#allocation2 + $0x20] sm:$0xff]  ;;  %v227_v42 = vld [vmem:[#allocation2 + $0x68] sm:$0xff] }
  0x47   : > { %v233_v27 = vrot.slane %v213_v21, %v232_v23  ;;  %v219_v29 = vld [vmem:[#allocation2 + $0x28] sm:$0xff]  ;;  %v220_v30 = vld [vmem:[#allocation2 + $0x30] sm:$0xff]  ;;  %v226_v41 = vld [vmem:[#allocation2 + $0x60] sm:$0xff] }
  0x48   : > { %v221_v31 = vld [vmem:[#allocation2 + $0x38] sm:$0xff]  ;;  %v222_v32 = vld [vmem:[#allocation2 + $0x40] sm:$0xff]  ;;  %v228_v47 = vld [vmem:[#allocation2 + $0x70] sm:$0xff] }
  0x49   : > { %vm234_vm1 = vcmp.ge.s32.totalorder %v214_v22, %v233_v27  ;;  %vm235_vm2 = vcmp.ge.s32.totalorder %v215_v24, %v233_v27  ;;  %vm236_vm3 = vcmp.ge.s32.totalorder %v216_v25, %v233_v27  ;;  %vm237_vm4 = vcmp.ge.s32.totalorder %v217_v26, %v233_v27  ;;  %v229_v48 = vld [vmem:[#allocation2 + $0x78] sm:$0xff] }
  0x4a   : > { %v250_v35 = vsel %vm234_vm1, 1, %v522_v34  ;;  %v251_v36 = vsel %vm235_vm2, 1, %v522_v34  ;;  %v252_v37 = vsel %vm236_vm3, 1, %v522_v34  ;;  %v253_v38 = vsel %vm237_vm4, 1, %v522_v34 }
  0x4b   : > { %266 = vst [vmem:[%s642_s24] sm:$0xff] %v250_v35  ;;  %267 = vst [vmem:[%s642_s24 + $0x8] sm:$0xff] %v251_v36  ;;  %vm238_vm5 = vcmp.ge.s32.totalorder %v218_v28, %v233_v27  ;;  %vm239_vm6 = vcmp.ge.s32.totalorder %v219_v29, %v233_v27  ;;  %vm240_vm7 = vcmp.ge.s32.totalorder %v220_v30, %v233_v27 }
  0x4c   : > { %268 = vst [vmem:[%s642_s24 + $0x10] sm:$0xff] %v252_v37  ;;  %269 = vst [vmem:[%s642_s24 + $0x18] sm:$0xff] %v253_v38  ;;  %vm241_vm8 = vcmp.ge.s32.totalorder %v221_v31, %v233_v27  ;;  %v254_v43 = vsel %vm238_vm5, 1, %v522_v34  ;;  %v255_v44 = vsel %vm239_vm6, 1, %v522_v34  ;;  %v256_v45 = vsel %vm240_vm7, 1, %v522_v34 }
  0x4d   : > { %v257_v46 = vsel %vm241_vm8, 1, %v522_v34  ;;  %270 = vst [vmem:[%s642_s24 + $0x20] sm:$0xff] %v254_v43  ;;  %271 = vst [vmem:[%s642_s24 + $0x28] sm:$0xff] %v255_v44  ;;  %vm242_vm9 = vcmp.ge.s32.totalorder %v222_v32, %v233_v27  ;;  %vm243_vm10 = vcmp.ge.s32.totalorder %v223_v33, %v233_v27  ;;  %vm244_vm11 = vcmp.ge.s32.totalorder %v224_v39, %v233_v27 }
  0x4e   : > { %272 = vst [vmem:[%s642_s24 + $0x30] sm:$0xff] %v256_v45  ;;  %273 = vst [vmem:[%s642_s24 + $0x38] sm:$0xff] %v257_v46  ;;  %vm245_vm12 = vcmp.ge.s32.totalorder %v225_v40, %v233_v27  ;;  %v258_v49 = vsel %vm242_vm9, 1, %v522_v34  ;;  %v259_v50 = vsel %vm243_vm10, 1, %v522_v34  ;;  %v260_v51 = vsel %vm244_vm11, 1, %v522_v34 }
  0x4f   : > { %v261_v52 = vsel %vm245_vm12, 1, %v522_v34  ;;  %274 = vst [vmem:[%s642_s24 + $0x40] sm:$0xff] %v258_v49  ;;  %275 = vst [vmem:[%s642_s24 + $0x48] sm:$0xff] %v259_v50  ;;  %vm246_vm13 = vcmp.ge.s32.totalorder %v226_v41, %v233_v27  ;;  %vm247_vm14 = vcmp.ge.s32.totalorder %v227_v42, %v233_v27  ;;  %vm248_vm15 = vcmp.ge.s32.totalorder %v228_v47, %v233_v27 }
  0x50   : > { %276 = vst [vmem:[%s642_s24 + $0x50] sm:$0xff] %v260_v51  ;;  %277 = vst [vmem:[%s642_s24 + $0x58] sm:$0xff] %v261_v52  ;;  %vm249_vm0 = vcmp.ge.s32.totalorder %v229_v48, %v233_v27  ;;  %v262_v53 = vsel %vm246_vm13, 1, %v522_v34  ;;  %v263_v54 = vsel %vm247_vm14, 1, %v522_v34  ;;  %v264_v55 = vsel %vm248_vm15, 1, %v522_v34 }
  0x51   : > { %v265_v56 = vsel %vm249_vm0, 1, %v522_v34  ;;  %278 = vst [vmem:[%s642_s24 + $0x60] sm:$0xff] %v262_v53  ;;  %279 = vst [vmem:[%s642_s24 + $0x68] sm:$0xff] %v263_v54 }
  0x52   : > { %280 = vst [vmem:[%s642_s24 + $0x70] sm:$0xff] %v264_v55  ;;  %281 = vst [vmem:[%s642_s24 + $0x78] sm:$0xff] %v265_v56 }
  0x53 PF: > { %s14_s11 = sadd.s32 1, %s519_s11   ;;  %s687_s6 = smov %s503_s7 }
  0x54   : > { %p11_p7 = scmp.ge.s32.totalorder %s14_s11, 4   ;;  %s688_s7 = smov %s507_s8 }
  0x55   : > { %s689_s8 = smov %s582_s18  ;;  %s690_s9 = smov %s515_s10 }
  0x56   : > { %s691_s10 = smov %s693_s13  ;;  %13 = sbr.rel (!%p11_p7) target bundleno = 4 (0x4), region = 68 }
  0x5d   :  { %312 = vsyncpa [#allocation4], 1 }
  0x5e   :  { %314 = vsyncpa [#allocation4 + $0x1], 1 }

</bundles_post_ra>
